<compile_context>
chip_gen: v5e
topology: v5e:2x2
jax: 0.10.0
libtpu: 0.0.40
codegen_flags: <defaults>
</compile_context>

<pallas_src>
import jax
import jax.numpy as jnp
from jax.experimental import pallas as pl
from jax.experimental.pallas import tpu as pltpu

_LANE = 128
_ACC_SUB = 8            # f32 accumulator sublanes
_MAX_BLOCK_ROWS = 4096  # 4096 * 128 * 4B = 2 MiB per f32 input block


def _sublane_multiple(dtype) -> int:
    """Minimum sublane multiple for a dtype's native TPU tiling."""
    itemsize = jnp.dtype(dtype).itemsize
    return {4: 8, 2: 16, 1: 32}.get(itemsize, 8)


def _sumsq_kernel(x_ref, y_ref, acc_ref):
    """Accumulate sum((x - y)^2) of this block into the (8, 128) VMEM accumulator."""
    @pl.when(pl.program_id(0) == 0)
    def _():
        acc_ref[...] = jnp.zeros_like(acc_ref)

    d = x_ref[...].astype(jnp.float32) - y_ref[...].astype(jnp.float32)
    sq = d * d
    # (block_rows, 128) -> (block_rows // 8, 8, 128) is a layout-preserving vreg split;
    # the axis-0 sum is pure VPU adds (no cross-lane XLU work in the steady state).
    acc_ref[...] += jnp.sum(sq.reshape(-1, _ACC_SUB, _LANE), axis=0)


def explanation_loss(expl, local_labels):
    """Equivalent of torch.nn.MSELoss()(expl.reshape(-1), local_labels)."""
    x = jnp.reshape(expl, (-1,))
    y = jnp.reshape(local_labels, (-1,))
    assert x.shape == y.shape, "MSELoss requires matching (flattened) shapes"
    n = x.shape[0]

    if n == 0:
        # torch.nn.MSELoss on empty inputs yields nan (0/0); mirror that.
        return jnp.float32(jnp.nan)

    # Sublane alignment required by the input dtypes (8 for f32, 16 for bf16, ...).
    sub = max(_ACC_SUB, _sublane_multiple(x.dtype), _sublane_multiple(y.dtype))

    rows_total = n // _LANE
    rows_aligned = (rows_total // sub) * sub

    if rows_aligned == 0:
        # Smaller than one minimal tile: plain JAX is the right tool.
        d = x.astype(jnp.float32) - y.astype(jnp.float32)
        return jnp.sum(d * d) / jnp.float32(n)

    block_rows = min(_MAX_BLOCK_ROWS, rows_aligned)
    num_blocks = rows_aligned // block_rows
    main_rows = num_blocks * block_rows
    main_elems = main_rows * _LANE

    x2 = x[:main_elems].reshape(main_rows, _LANE)
    y2 = y[:main_elems].reshape(main_rows, _LANE)

    bytes_accessed = main_elems * (x.dtype.itemsize + y.dtype.itemsize)

    acc = pl.pallas_call(
        _sumsq_kernel,
        out_shape=jax.ShapeDtypeStruct((_ACC_SUB, _LANE), jnp.float32),
        grid_spec=pltpu.PrefetchScalarGridSpec(
            num_scalar_prefetch=0,
            grid=(num_blocks,),
            in_specs=[
                pl.BlockSpec((block_rows, _LANE), lambda i: (i, 0)),
                pl.BlockSpec((block_rows, _LANE), lambda i: (i, 0)),
            ],
            # Same output block every grid step -> VMEM-resident accumulator.
            out_specs=pl.BlockSpec((_ACC_SUB, _LANE), lambda i: (0, 0)),
        ),
        compiler_params=pltpu.CompilerParams(
            dimension_semantics=("arbitrary",),
        ),
        cost_estimate=pl.CostEstimate(
            flops=3 * main_elems, transcendentals=0, bytes_accessed=bytes_accessed
        ),
    )(x2, y2)

    total = jnp.sum(acc)

    # Ragged tail (strictly less than one block): handled in plain jnp, no padded copy.
    if main_elems < n:
        dt = x[main_elems:].astype(jnp.float32) - y[main_elems:].astype(jnp.float32)
        total = total + jnp.sum(dt * dt)

    # TODO(synk): on v7x, split the grid across the 2 TensorCores (leading "parallel"
    # axis with a per-core accumulator output block) for up to ~2x on that generation.
    return total / jnp.float32(n)


if __name__ == "__main__":
    key = jax.random.PRNGKey(0)
    k1, k2 = jax.random.split(key)

    # Small shapes consistent with the module: expl is an explanation map (NCHW),
    # local_labels is the flattened target of the same total size.
    expl = jax.random.normal(k1, (2, 4, 16, 16), dtype=jnp.float32)
    local_labels = jax.random.normal(k2, (2 * 4 * 16 * 16,), dtype=jnp.float32)

    loss = explanation_loss(expl, local_labels)
    loss = jax.block_until_ready(loss)

    # Self-check against plain-JAX reference (same semantics as torch.nn.MSELoss).
    ref = jnp.mean((expl.reshape(-1) - local_labels) ** 2)
    assert jnp.allclose(loss, ref, rtol=1e-5, atol=1e-5), (loss, ref)

    print("KERNEL_OK")
</pallas_src>

<mosaic_0001>
module attributes {stable_mosaic.version = 11 : i64} {
  func.func @_sumsq_kernel(%arg0: i32, %arg1: memref<16x128xf32, #tpu.memory_space<vmem>>, %arg2: memref<16x128xf32, #tpu.memory_space<vmem>>, %arg3: memref<8x128xf32, #tpu.memory_space<vmem>>) attributes {dimension_semantics = [#tpu.dimension_semantics<arbitrary>], iteration_bounds = array<i64: 1>, scalar_prefetch = 0 : i64, scratch_operands = 0 : i64, tpu.core_type = #tpu.core_type<tc>, window_params = [{transform_indices = @transform_0, window_bounds = array<i64: 16, 128>}, {transform_indices = @transform_1, window_bounds = array<i64: 16, 128>}, {pipeline_mode = #tpu.pipeline_mode<synchronous>, transform_indices = @transform_2, window_bounds = array<i64: 8, 128>}]} {
    %c0_i32 = arith.constant 0 : i32
    %0 = arith.cmpi eq, %arg0, %c0_i32 : i32
    %1 = arith.extui %0 : i1 to i32
    %c0_i32_0 = arith.constant 0 : i32
    %2 = arith.cmpi ne, %1, %c0_i32_0 : i32
    scf.if %2 {
      %cst_8 = arith.constant 0.000000e+00 : f32
      %12 = vector.broadcast %cst_8 : f32 to vector<8x128xf32>
      %c0_9 = arith.constant 0 : index
      %c0_10 = arith.constant 0 : index
      %13 = vector.load %arg3[%c0_9, %c0_10] : memref<8x128xf32, #tpu.memory_space<vmem>>, vector<8x128xf32>
      tpu.vector_store %arg3[%c0_9, %c0_10], %12 {strides = array<i32>} : memref<8x128xf32, #tpu.memory_space<vmem>>, vector<8x128xf32>,
    } else {
    }
    %c0 = arith.constant 0 : index
    %c0_1 = arith.constant 0 : index
    %3 = vector.load %arg1[%c0, %c0_1] : memref<16x128xf32, #tpu.memory_space<vmem>>, vector<16x128xf32>
    %c0_2 = arith.constant 0 : index
    %c0_3 = arith.constant 0 : index
    %4 = vector.load %arg2[%c0_2, %c0_3] : memref<16x128xf32, #tpu.memory_space<vmem>>, vector<16x128xf32>
    %5 = arith.subf %3, %4 : vector<16x128xf32>
    %6 = arith.mulf %5, %5 : vector<16x128xf32>
    %c0_4 = arith.constant 0 : index
    %c0_5 = arith.constant 0 : index
    %7 = vector.load %arg3[%c0_4, %c0_5] : memref<8x128xf32, #tpu.memory_space<vmem>>, vector<8x128xf32>
    %8 = vector.shape_cast %6 : vector<16x128xf32> to vector<2x8x128xf32>
    %cst = arith.constant dense<0.000000e+00> : vector<8x128xf32>
    %9 = vector.multi_reduction <add>, %8, %cst [0] : vector<2x8x128xf32> to vector<8x128xf32>
    %10 = arith.addf %7, %9 : vector<8x128xf32>
    %c0_6 = arith.constant 0 : index
    %c0_7 = arith.constant 0 : index
    %11 = vector.load %arg3[%c0_6, %c0_7] : memref<8x128xf32, #tpu.memory_space<vmem>>, vector<8x128xf32>
    tpu.vector_store %arg3[%c0_6, %c0_7], %10 {strides = array<i32>} : memref<8x128xf32, #tpu.memory_space<vmem>>, vector<8x128xf32>,
    return
  }
  func.func @transform_0(%arg0: i32) -> (i32, i32) {
    %c0_i32 = arith.constant 0 : i32
    %c0_i32_0 = arith.constant 0 : i32
    return %arg0, %c0_i32 : i32, i32
  }
  func.func @transform_1(%arg0: i32) -> (i32, i32) {
    %c0_i32 = arith.constant 0 : i32
    %c0_i32_0 = arith.constant 0 : i32
    return %arg0, %c0_i32 : i32, i32
  }
  func.func @transform_2(%arg0: i32) -> (i32, i32) {
    %c0_i32 = arith.constant 0 : i32
    %c0_i32_0 = arith.constant 0 : i32
    %c0_i32_1 = arith.constant 0 : i32
    return %c0_i32, %c0_i32_0 : i32, i32
  }
}

</mosaic_0001>

<bundles_post_ra>
// kernel: tpu_custom_call.1
= control target key start
LH: loop header
LB: loop body
LE: loop exit
PB: predicated region body
PF: predicated region fallthrough
CT: control target
= control target key end

     0   :  { %7 = vsyncpa [#allocation3], 0  ;;  %s192_s0 = inlined_call_operand.hbm [shape: f32[16,128], index: 0, kind: input, shape index: {}]   ;;  %s193_s1 = inlined_call_operand.hbm [shape: f32[16,128], index: 1, kind: input, shape index: {}]   ;;  %s194_s2 = inlined_call_operand.hbm [shape: f32[8,128], index: 2, kind: output, shape index: {}]  }
   0x1   :  { %8 = vsyncpa [#allocation6], 0 }
   0x2   :  { %9 = vsyncpa [#allocation4], 0  ;;  %s14_s11 = sshll.u32 %s192_s0, 4  ;;  %s163_s12 = smov [#allocation2]   ;;  %s15_s11 = int_to_ptr.hbm [resolvable:$true] %s14_s11 }
   0x3   :  { %s16_s13 = sshll.u32 %s163_s12, 4  ;;  %s27_s16 = sshll.u32 %s193_s1, 4  ;;  %s17_s13 = int_to_ptr.vmem [resolvable:$true] %s16_s13  ;;  %s28_s16 = int_to_ptr.hbm [resolvable:$true] %s27_s16 }
   0x4   :  { %s164_s17 = smov 128   ;;  %s165_s18 = smov 8  }
   0x5   :  { %22 = dma.hbm_to_vmem [thread:$0]  %s15_s11, 256, %s17_s13, [#allocation3], %s164_s17, %s164_s17, %s165_s18  }
   0x6   :  { %s166_s19 = smov [#allocation5]  }
   0x7   :  { %s29_s20 = sshll.u32 %s166_s19, 4  ;;  %s30_s20 = int_to_ptr.vmem [resolvable:$true] %s29_s20 }
   0x8   :  { %35 = dma.hbm_to_vmem [thread:$0]  %s28_s16, 256, %s30_s20, [#allocation6], %s164_s17, %s164_s17, %s165_s18  }
   0x9   :  { %157 = dma.done.wait [#allocation3], 256  }
   0xa   :  { %158 = vsyncadd [#allocation3], 4294967040 }
   0xb   :  { %159 = dma.done.wait [#allocation6], 256  }
   0xc   :  { %160 = vsyncadd [#allocation6], 4294967040  ;;  %v49_v0 = vld [vmem:[#allocation2] sm:$0xff]  ;;  %v50_v1 = vld [vmem:[#allocation2 + $0x8] sm:$0xff]  ;;  %s167_s0 = smov [#allocation7]   ;;  %s68_s23 = sshll.u32 %s194_s2, 4  ;;  %s69_s23 = int_to_ptr.hbm [resolvable:$true] %s68_s23 }
   0xd   :  { %v51_v2 = vld [vmem:[#allocation5] sm:$0xff]  ;;  %v52_v3 = vld [vmem:[#allocation5 + $0x8] sm:$0xff]  ;;  %s66_s1 = sshll.u32 %s167_s0, 4  ;;  %s67_s1 = int_to_ptr.vmem [resolvable:$true] %s66_s1 }
   0xe   :  { %v53_v4 = vsub.f32 %v49_v0, %v51_v2  ;;  %v54_v5 = vsub.f32 %v50_v1, %v52_v3 }
  0x10   :  { %v55_v6 = vmul.f32 %v53_v4, %v53_v4  ;;  %v56_v7 = vmul.f32 %v54_v5, %v54_v5 }
  0x12   :  { %v58_v8 = vadd.f32 %v56_v7, %v55_v6 }
  0x14   :  { %60 = vst [vmem:[#allocation7] sm:$0xff] %v58_v8 }
  0x15   :  { %71 = dma.vmem_to_hbm [thread:$0]  %s67_s1, 128, %s69_s23, [#allocation4]  }
  0x16   :  { %161 = dma.done.wait [#allocation4], 128  }
  0x17   :  { %162 = vsyncadd [#allocation4], 4294967168 }
  0x18   :  { %76 = vsyncpa [#allocation3], 1 }
  0x19   :  { %77 = vsyncpa [#allocation6], 1 }
  0x1a   :  { %78 = vsyncpa [#allocation4], 1 }

</bundles_post_ra>
